<compile_context>
chip_gen: v5e
topology: v5e:2x2
jax: 0.10.0
libtpu: 0.0.40
codegen_flags: <defaults>
</compile_context>

<pallas_src>
import functools

import jax
import jax.numpy as jnp
from jax.experimental import pallas as pl
from jax.experimental.pallas import tpu as pltpu


def _round_up(x, m):
    return -(-x // m) * m


# ----------------------------------------------------------------------------
# Kernel
# ----------------------------------------------------------------------------
def _qnet_kernel(s_ref, a_ref,
                 w1s_ref, w1a_ref, b1_ref,
                 w2a_ref, w2b_ref, b2a_ref, b2b_ref,
                 w3a_ref, w3b_ref, b3_ref,
                 q_ref, *, hp, compute_dtype):
    s = s_ref[...].astype(compute_dtype)
    a = a_ref[...].astype(compute_dtype)

    # Layer 1: both heads fused along lanes (cols [0:hp]=head1, [hp:2hp]=head2);
    # the concat of (state, action) is avoided by splitting W1 row-wise.
    h = jnp.dot(s, w1s_ref[...], preferred_element_type=jnp.float32)
    h = h + jnp.dot(a, w1a_ref[...], preferred_element_type=jnp.float32)
    h = jnp.maximum(h + b1_ref[...], 0.0)

    # Lane-aligned per-head slices (hp is a multiple of 128).
    h1 = h[:, :hp].astype(compute_dtype)
    h2 = h[:, hp:].astype(compute_dtype)

    # Layer 2: two per-head (hp, hp) matmuls (no block-diagonal zero work).
    g1 = jnp.dot(h1, w2a_ref[...], preferred_element_type=jnp.float32)
    g2 = jnp.dot(h2, w2b_ref[...], preferred_element_type=jnp.float32)
    g1 = jnp.maximum(g1 + b2a_ref[...], 0.0)
    g2 = jnp.maximum(g2 + b2b_ref[...], 0.0)

    # Layer 3: lane-dense 128-wide output; q1 in lane 0, q2 in lane 1.
    q = jnp.dot(g1.astype(compute_dtype), w3a_ref[...],
                preferred_element_type=jnp.float32)
    q = q + jnp.dot(g2.astype(compute_dtype), w3b_ref[...],
                    preferred_element_type=jnp.float32)
    q_ref[...] = (q + b3_ref[...]).astype(q_ref.dtype)


# ----------------------------------------------------------------------------
# Parameter packing: PyTorch-layout params -> fused / padded kernel weights.
# Done once (outside the hot path).
# ----------------------------------------------------------------------------
def pack_qnetwork_params(params, num_inputs, *, compute_dtype=jnp.bfloat16):
    w1, w2, w3 = params["w1"], params["w2"], params["w3"]
    w4, w5, w6 = params["w4"], params["w5"], params["w6"]
    b1, b2, b3 = params["b1"], params["b2"], params["b3"]
    b4, b5, b6 = params["b4"], params["b5"], params["b6"]

    H = w1.shape[1]
    Hp = _round_up(H, 128)          # per-head hidden width, padded to 128 lanes

    def pad_cols(x, width):
        return jnp.pad(x, ((0, 0), (0, width - x.shape[1])))

    def pad_rows(x, height):
        return jnp.pad(x, ((0, height - x.shape[0]), (0, 0)))

    # Layer 1: [head1 | head2], each padded to Hp lanes; rows split later into
    # state / action parts.
    w1f = jnp.concatenate([pad_cols(w1, Hp), pad_cols(w4, Hp)], axis=1)  # (S+A, 2Hp)
    b1f = jnp.concatenate([pad_cols(b1, Hp), pad_cols(b4, Hp)], axis=1)  # (1, 2Hp)

    # Layer 2: separate per-head weights, zero-padded to (Hp, Hp).
    w2a = pad_cols(pad_rows(w2, Hp), Hp)
    w2b = pad_cols(pad_rows(w5, Hp), Hp)
    b2a = pad_cols(b2, Hp)
    b2b = pad_cols(b5, Hp)

    # Layer 3: lane-dense (Hp, 128); q1 -> lane 0, q2 -> lane 1, rest zero.
    w3a = jnp.zeros((Hp, 128), jnp.float32).at[:H, 0:1].set(w3)
    w3b = jnp.zeros((Hp, 128), jnp.float32).at[:H, 1:2].set(w6)
    b3f = jnp.zeros((1, 128), jnp.float32).at[:, 0:1].set(b3).at[:, 1:2].set(b6)

    return {
        "w1s": w1f[:num_inputs].astype(compute_dtype),
        "w1a": w1f[num_inputs:].astype(compute_dtype),
        "b1": b1f.astype(jnp.float32),
        "w2a": w2a.astype(compute_dtype),
        "w2b": w2b.astype(compute_dtype),
        "b2a": b2a.astype(jnp.float32),
        "b2b": b2b.astype(jnp.float32),
        "w3a": w3a.astype(compute_dtype),
        "w3b": w3b.astype(compute_dtype),
        "b3": b3f.astype(jnp.float32),
    }


# ----------------------------------------------------------------------------
# Wrapper
# ----------------------------------------------------------------------------
def qnetwork_forward(state, action, packed, *, block_b=512,
                     compute_dtype=jnp.bfloat16):
    """Pallas-backed forward pass of the SAC QNetwork.

    state:  (B, num_inputs)  float32
    action: (B, num_actions) float32
    packed: output of pack_qnetwork_params
    returns: (q1, q2), each (B, 1) float32
    """
    B, num_inputs = state.shape
    num_actions = action.shape[1]
    Hp = packed["w2a"].shape[0]

    # Batch tile: multiple of 8 (sublane) unless it covers the whole batch;
    # guarantee >= 2 grid steps when B > 8 so both v7x TensorCores get work.
    block_b = max(8, _round_up(int(block_b), 8))
    if B <= 8:
        tb = B
    else:
        half = _round_up(pl.cdiv(B, 2), 8)
        tb = max(8, min(block_b, half))
    nb = pl.cdiv(B, tb)

    kernel = functools.partial(_qnet_kernel, hp=Hp, compute_dtype=compute_dtype)

    def batch_spec(d):
        return pl.BlockSpec((tb, d), lambda i: (i, 0))

    def const_spec(shape):
        # Constant index_map -> weights stay VMEM-resident across batch tiles.
        # (Could additionally request pipeline_mode=pl.Buffered(1) to drop the
        #  second weight buffer; the computed vmem_limit below already leaves
        #  headroom for the default double-buffering.)
        return pl.BlockSpec(shape, lambda i: (0, 0))

    in_specs = [
        batch_spec(num_inputs),           # state
        batch_spec(num_actions),          # action
        const_spec((num_inputs, 2 * Hp)),  # w1s
        const_spec((num_actions, 2 * Hp)),  # w1a
        const_spec((1, 2 * Hp)),          # b1
        const_spec((Hp, Hp)),             # w2a
        const_spec((Hp, Hp)),             # w2b
        const_spec((1, Hp)),              # b2a
        const_spec((1, Hp)),              # b2b
        const_spec((Hp, 128)),            # w3a
        const_spec((Hp, 128)),            # w3b
        const_spec((1, 128)),             # b3
    ]
    out_specs = pl.BlockSpec((tb, 128), lambda i: (i, 0))

    # Cost estimate: the work the kernel actually performs (padded shapes).
    flops = 2 * B * ((num_inputs + num_actions) * 2 * Hp
                     + 2 * Hp * Hp
                     + 2 * Hp * 128)
    weight_bytes = sum(int(v.size) * v.dtype.itemsize for v in packed.values())
    bytes_accessed = (
        state.size * state.dtype.itemsize
        + action.size * action.dtype.itemsize
        + weight_bytes
        + B * 128 * 4)

    # VMEM budget from the actual footprint (default double-buffering of every
    # block) plus intermediates, clamped to [16 MiB, 64 MiB] (v7x physical).
    block_io_bytes = tb * (num_inputs + num_actions) * 4 + tb * 128 * 4
    interm_bytes = 6 * tb * 2 * Hp * 4
    vmem_needed = 2 * (weight_bytes + block_io_bytes) + interm_bytes + (2 << 20)
    vmem_limit = int(min(64 * 1024 * 1024, max(16 * 1024 * 1024, vmem_needed)))

    q = pl.pallas_call(
        kernel,
        grid=(nb,),
        in_specs=in_specs,
        out_specs=out_specs,
        out_shape=jax.ShapeDtypeStruct((B, 128), jnp.float32),
        compiler_params=pltpu.CompilerParams(
            dimension_semantics=("parallel",),
            vmem_limit_bytes=vmem_limit),
        cost_estimate=pl.CostEstimate(
            flops=flops, transcendentals=0, bytes_accessed=bytes_accessed),
    )(state, action,
      packed["w1s"], packed["w1a"], packed["b1"],
      packed["w2a"], packed["w2b"], packed["b2a"], packed["b2b"],
      packed["w3a"], packed["w3b"], packed["b3"])

    return q[:, 0:1], q[:, 1:2]


# ----------------------------------------------------------------------------
# Init (matches torch xavier_uniform_ / zero bias), PyTorch-equivalent layout:
# weights stored as (in_features, out_features) so the kernel does y = x@W + b.
# ----------------------------------------------------------------------------
def _xavier_uniform(key, fan_in, fan_out, gain=1.0):
    limit = gain * jnp.sqrt(6.0 / (fan_in + fan_out))
    return jax.random.uniform(key, (fan_in, fan_out), jnp.float32, -limit, limit)


def init_qnetwork_params(key, num_inputs, num_actions, hidden_dim):
    d_in = num_inputs + num_actions
    keys = jax.random.split(key, 6)
    return {
        "w1": _xavier_uniform(keys[0], d_in, hidden_dim),
        "b1": jnp.zeros((1, hidden_dim), jnp.float32),
        "w2": _xavier_uniform(keys[1], hidden_dim, hidden_dim),
        "b2": jnp.zeros((1, hidden_dim), jnp.float32),
        "w3": _xavier_uniform(keys[2], hidden_dim, 1),
        "b3": jnp.zeros((1, 1), jnp.float32),
        "w4": _xavier_uniform(keys[3], d_in, hidden_dim),
        "b4": jnp.zeros((1, hidden_dim), jnp.float32),
        "w5": _xavier_uniform(keys[4], hidden_dim, hidden_dim),
        "b5": jnp.zeros((1, hidden_dim), jnp.float32),
        "w6": _xavier_uniform(keys[5], hidden_dim, 1),
        "b6": jnp.zeros((1, 1), jnp.float32),
    }


def _reference_forward(state, action, p):
    xu = jnp.concatenate([state, action], axis=1)
    h1 = jax.nn.relu(xu @ p["w1"] + p["b1"])
    h1 = jax.nn.relu(h1 @ p["w2"] + p["b2"])
    q1 = h1 @ p["w3"] + p["b3"]
    h2 = jax.nn.relu(xu @ p["w4"] + p["b4"])
    h2 = jax.nn.relu(h2 @ p["w5"] + p["b5"])
    q2 = h2 @ p["w6"] + p["b6"]
    return q1, q2


if __name__ == "__main__":
    batch = 2
    num_inputs = 16
    num_actions = 8
    hidden_dim = 32

    key = jax.random.PRNGKey(0)
    k_param, k_state, k_action = jax.random.split(key, 3)

    params = init_qnetwork_params(k_param, num_inputs, num_actions, hidden_dim)
    state = jax.random.normal(k_state, (batch, num_inputs), jnp.float32)
    action = jax.random.normal(k_action, (batch, num_actions), jnp.float32)

    q1_ref, q2_ref = _reference_forward(state, action, params)

    # Production path: bf16 MXU operands, f32 accumulation.
    packed_bf16 = pack_qnetwork_params(params, num_inputs,
                                       compute_dtype=jnp.bfloat16)
    q1, q2 = qnetwork_forward(state, action, packed_bf16,
                              compute_dtype=jnp.bfloat16)
    jax.block_until_ready((q1, q2))
    assert q1.shape == (batch, 1) and q2.shape == (batch, 1)
    assert jnp.allclose(q1, q1_ref, atol=5e-2, rtol=5e-2)
    assert jnp.allclose(q2, q2_ref, atol=5e-2, rtol=5e-2)

    # Debug-only full-f32 path (sanity check of the fused/padded layout).
    packed_f32 = pack_qnetwork_params(params, num_inputs,
                                      compute_dtype=jnp.float32)
    q1f, q2f = qnetwork_forward(state, action, packed_f32,
                                compute_dtype=jnp.float32)
    jax.block_until_ready((q1f, q2f))
    assert jnp.allclose(q1f, q1_ref, atol=1e-3, rtol=1e-3)
    assert jnp.allclose(q2f, q2_ref, atol=1e-3, rtol=1e-3)

    print("KERNEL_OK")
</pallas_src>

<mosaic_0001>
module attributes {stable_mosaic.version = 11 : i64} {
  func.func @_qnet_kernel(%arg0: i32, %arg1: memref<2x16xf32, #tpu.memory_space<vmem>>, %arg2: memref<2x8xf32, #tpu.memory_space<vmem>>, %arg3: memref<16x256xbf16, #tpu.memory_space<vmem>>, %arg4: memref<8x256xbf16, #tpu.memory_space<vmem>>, %arg5: memref<1x256xf32, #tpu.memory_space<vmem>>, %arg6: memref<128x128xbf16, #tpu.memory_space<vmem>>, %arg7: memref<128x128xbf16, #tpu.memory_space<vmem>>, %arg8: memref<1x128xf32, #tpu.memory_space<vmem>>, %arg9: memref<1x128xf32, #tpu.memory_space<vmem>>, %arg10: memref<128x128xbf16, #tpu.memory_space<vmem>>, %arg11: memref<128x128xbf16, #tpu.memory_space<vmem>>, %arg12: memref<1x128xf32, #tpu.memory_space<vmem>>, %arg13: memref<2x128xf32, #tpu.memory_space<vmem>>) attributes {dimension_semantics = [#tpu.dimension_semantics<parallel>], iteration_bounds = array<i64: 1>, scalar_prefetch = 0 : i64, scratch_operands = 0 : i64, tpu.core_type = #tpu.core_type<tc>, window_params = [{transform_indices = @transform_0, window_bounds = array<i64: 2, 16>}, {transform_indices = @transform_1, window_bounds = array<i64: 2, 8>}, {pipeline_mode = #tpu.pipeline_mode<synchronous>, transform_indices = @transform_2, window_bounds = array<i64: 16, 256>}, {pipeline_mode = #tpu.pipeline_mode<synchronous>, transform_indices = @transform_3, window_bounds = array<i64: 8, 256>}, {pipeline_mode = #tpu.pipeline_mode<synchronous>, transform_indices = @transform_4, window_bounds = array<i64: 1, 256>}, {pipeline_mode = #tpu.pipeline_mode<synchronous>, transform_indices = @transform_5, window_bounds = array<i64: 128, 128>}, {pipeline_mode = #tpu.pipeline_mode<synchronous>, transform_indices = @transform_6, window_bounds = array<i64: 128, 128>}, {pipeline_mode = #tpu.pipeline_mode<synchronous>, transform_indices = @transform_7, window_bounds = array<i64: 1, 128>}, {pipeline_mode = #tpu.pipeline_mode<synchronous>, transform_indices = @transform_8, window_bounds = array<i64: 1, 128>}, {pipeline_mode = #tpu.pipeline_mode<synchronous>, transform_indices = @transform_9, window_bounds = array<i64: 128, 128>}, {pipeline_mode = #tpu.pipeline_mode<synchronous>, transform_indices = @transform_10, window_bounds = array<i64: 128, 128>}, {pipeline_mode = #tpu.pipeline_mode<synchronous>, transform_indices = @transform_11, window_bounds = array<i64: 1, 128>}, {transform_indices = @transform_12, window_bounds = array<i64: 2, 128>}]} {
    %c0 = arith.constant 0 : index
    %c0_0 = arith.constant 0 : index
    %0 = vector.load %arg1[%c0, %c0_0] : memref<2x16xf32, #tpu.memory_space<vmem>>, vector<2x16xf32>
    %1 = arith.truncf %0 : vector<2x16xf32> to vector<2x16xbf16>
    %c0_1 = arith.constant 0 : index
    %c0_2 = arith.constant 0 : index
    %2 = vector.load %arg2[%c0_1, %c0_2] : memref<2x8xf32, #tpu.memory_space<vmem>>, vector<2x8xf32>
    %3 = arith.truncf %2 : vector<2x8xf32> to vector<2x8xbf16>
    %c0_3 = arith.constant 0 : index
    %c0_4 = arith.constant 0 : index
    %4 = vector.load %arg3[%c0_3, %c0_4] : memref<16x256xbf16, #tpu.memory_space<vmem>>, vector<16x256xbf16>
    %cst = arith.constant dense<0.000000e+00> : vector<2x256xf32>
    %5 = tpu.matmul %1, %4, %cst {dimension_numbers = #tpu.dot_dimension_numbers<[1], [0], [0], [1], [0, 0, 1, 1], [], []>} : vector<2x16xbf16>, vector<16x256xbf16>, vector<2x256xf32> -> vector<2x256xf32>
    %c0_5 = arith.constant 0 : index
    %c0_6 = arith.constant 0 : index
    %6 = vector.load %arg4[%c0_5, %c0_6] : memref<8x256xbf16, #tpu.memory_space<vmem>>, vector<8x256xbf16>
    %cst_7 = arith.constant dense<0.000000e+00> : vector<2x256xf32>
    %7 = tpu.matmul %3, %6, %cst_7 {dimension_numbers = #tpu.dot_dimension_numbers<[1], [0], [0], [1], [0, 0, 1, 1], [], []>} : vector<2x8xbf16>, vector<8x256xbf16>, vector<2x256xf32> -> vector<2x256xf32>
    %8 = arith.addf %5, %7 : vector<2x256xf32>
    %c0_8 = arith.constant 0 : index
    %c0_9 = arith.constant 0 : index
    %9 = vector.load %arg5[%c0_8, %c0_9] : memref<1x256xf32, #tpu.memory_space<vmem>>, vector<1x256xf32>
    %10 = vector.broadcast %9 : vector<1x256xf32> to vector<2x256xf32>
    %11 = arith.addf %8, %10 : vector<2x256xf32>
    %cst_10 = arith.constant 0.000000e+00 : f32
    %12 = vector.broadcast %cst_10 : f32 to vector<2x256xf32>
    %13 = arith.maximumf %11, %12 : vector<2x256xf32>
    %14 = vector.extract_strided_slice %13 {offsets = [0, 0], sizes = [2, 128], strides = [1, 1]} : vector<2x256xf32> to vector<2x128xf32>
    %15 = arith.truncf %14 : vector<2x128xf32> to vector<2x128xbf16>
    %16 = vector.extract_strided_slice %13 {offsets = [0, 128], sizes = [2, 128], strides = [1, 1]} : vector<2x256xf32> to vector<2x128xf32>
    %17 = arith.truncf %16 : vector<2x128xf32> to vector<2x128xbf16>
    %c0_11 = arith.constant 0 : index
    %c0_12 = arith.constant 0 : index
    %18 = vector.load %arg6[%c0_11, %c0_12] : memref<128x128xbf16, #tpu.memory_space<vmem>>, vector<128x128xbf16>
    %cst_13 = arith.constant dense<0.000000e+00> : vector<2x128xf32>
    %19 = tpu.matmul %15, %18, %cst_13 {dimension_numbers = #tpu.dot_dimension_numbers<[1], [0], [0], [1], [0, 0, 1, 1], [], []>} : vector<2x128xbf16>, vector<128x128xbf16>, vector<2x128xf32> -> vector<2x128xf32>
    %c0_14 = arith.constant 0 : index
    %c0_15 = arith.constant 0 : index
    %20 = vector.load %arg7[%c0_14, %c0_15] : memref<128x128xbf16, #tpu.memory_space<vmem>>, vector<128x128xbf16>
    %cst_16 = arith.constant dense<0.000000e+00> : vector<2x128xf32>
    %21 = tpu.matmul %17, %20, %cst_16 {dimension_numbers = #tpu.dot_dimension_numbers<[1], [0], [0], [1], [0, 0, 1, 1], [], []>} : vector<2x128xbf16>, vector<128x128xbf16>, vector<2x128xf32> -> vector<2x128xf32>
    %c0_17 = arith.constant 0 : index
    %c0_18 = arith.constant 0 : index
    %22 = vector.load %arg8[%c0_17, %c0_18] : memref<1x128xf32, #tpu.memory_space<vmem>>, vector<1x128xf32>
    %23 = vector.broadcast %22 : vector<1x128xf32> to vector<2x128xf32>
    %24 = arith.addf %19, %23 : vector<2x128xf32>
    %cst_19 = arith.constant 0.000000e+00 : f32
    %25 = vector.broadcast %cst_19 : f32 to vector<2x128xf32>
    %26 = arith.maximumf %24, %25 : vector<2x128xf32>
    %c0_20 = arith.constant 0 : index
    %c0_21 = arith.constant 0 : index
    %27 = vector.load %arg9[%c0_20, %c0_21] : memref<1x128xf32, #tpu.memory_space<vmem>>, vector<1x128xf32>
    %28 = vector.broadcast %27 : vector<1x128xf32> to vector<2x128xf32>
    %29 = arith.addf %21, %28 : vector<2x128xf32>
    %cst_22 = arith.constant 0.000000e+00 : f32
    %30 = vector.broadcast %cst_22 : f32 to vector<2x128xf32>
    %31 = arith.maximumf %29, %30 : vector<2x128xf32>
    %32 = arith.truncf %26 : vector<2x128xf32> to vector<2x128xbf16>
    %c0_23 = arith.constant 0 : index
    %c0_24 = arith.constant 0 : index
    %33 = vector.load %arg10[%c0_23, %c0_24] : memref<128x128xbf16, #tpu.memory_space<vmem>>, vector<128x128xbf16>
    %cst_25 = arith.constant dense<0.000000e+00> : vector<2x128xf32>
    %34 = tpu.matmul %32, %33, %cst_25 {dimension_numbers = #tpu.dot_dimension_numbers<[1], [0], [0], [1], [0, 0, 1, 1], [], []>} : vector<2x128xbf16>, vector<128x128xbf16>, vector<2x128xf32> -> vector<2x128xf32>
    %35 = arith.truncf %31 : vector<2x128xf32> to vector<2x128xbf16>
    %c0_26 = arith.constant 0 : index
    %c0_27 = arith.constant 0 : index
    %36 = vector.load %arg11[%c0_26, %c0_27] : memref<128x128xbf16, #tpu.memory_space<vmem>>, vector<128x128xbf16>
    %cst_28 = arith.constant dense<0.000000e+00> : vector<2x128xf32>
    %37 = tpu.matmul %35, %36, %cst_28 {dimension_numbers = #tpu.dot_dimension_numbers<[1], [0], [0], [1], [0, 0, 1, 1], [], []>} : vector<2x128xbf16>, vector<128x128xbf16>, vector<2x128xf32> -> vector<2x128xf32>
    %38 = arith.addf %34, %37 : vector<2x128xf32>
    %c0_29 = arith.constant 0 : index
    %c0_30 = arith.constant 0 : index
    %39 = vector.load %arg12[%c0_29, %c0_30] : memref<1x128xf32, #tpu.memory_space<vmem>>, vector<1x128xf32>
    %40 = vector.broadcast %39 : vector<1x128xf32> to vector<2x128xf32>
    %41 = arith.addf %38, %40 : vector<2x128xf32>
    %c0_31 = arith.constant 0 : index
    %c0_32 = arith.constant 0 : index
    %42 = vector.load %arg13[%c0_31, %c0_32] : memref<2x128xf32, #tpu.memory_space<vmem>>, vector<2x128xf32>
    tpu.vector_store %arg13[%c0_31, %c0_32], %41 {strides = array<i32>} : memref<2x128xf32, #tpu.memory_space<vmem>>, vector<2x128xf32>,
    return
  }
  func.func @transform_0(%arg0: i32) -> (i32, i32) {
    %c0_i32 = arith.constant 0 : i32
    %c0_i32_0 = arith.constant 0 : i32
    return %arg0, %c0_i32 : i32, i32
  }
  func.func @transform_1(%arg0: i32) -> (i32, i32) {
    %c0_i32 = arith.constant 0 : i32
    %c0_i32_0 = arith.constant 0 : i32
    return %arg0, %c0_i32 : i32, i32
  }
  func.func @transform_2(%arg0: i32) -> (i32, i32) {
    %c0_i32 = arith.constant 0 : i32
    %c0_i32_0 = arith.constant 0 : i32
    %c0_i32_1 = arith.constant 0 : i32
    return %c0_i32, %c0_i32_0 : i32, i32
  }
  func.func @transform_3(%arg0: i32) -> (i32, i32) {
    %c0_i32 = arith.constant 0 : i32
    %c0_i32_0 = arith.constant 0 : i32
    %c0_i32_1 = arith.constant 0 : i32
    return %c0_i32, %c0_i32_0 : i32, i32
  }
  func.func @transform_4(%arg0: i32) -> (i32, i32) {
    %c0_i32 = arith.constant 0 : i32
    %c0_i32_0 = arith.constant 0 : i32
    %c0_i32_1 = arith.constant 0 : i32
    return %c0_i32, %c0_i32_0 : i32, i32
  }
  func.func @transform_5(%arg0: i32) -> (i32, i32) {
    %c0_i32 = arith.constant 0 : i32
    %c0_i32_0 = arith.constant 0 : i32
    %c0_i32_1 = arith.constant 0 : i32
    return %c0_i32, %c0_i32_0 : i32, i32
  }
  func.func @transform_6(%arg0: i32) -> (i32, i32) {
    %c0_i32 = arith.constant 0 : i32
    %c0_i32_0 = arith.constant 0 : i32
    %c0_i32_1 = arith.constant 0 : i32
    return %c0_i32, %c0_i32_0 : i32, i32
  }
  func.func @transform_7(%arg0: i32) -> (i32, i32) {
    %c0_i32 = arith.constant 0 : i32
    %c0_i32_0 = arith.constant 0 : i32
    %c0_i32_1 = arith.constant 0 : i32
    return %c0_i32, %c0_i32_0 : i32, i32
  }
  func.func @transform_8(%arg0: i32) -> (i32, i32) {
    %c0_i32 = arith.constant 0 : i32
    %c0_i32_0 = arith.constant 0 : i32
    %c0_i32_1 = arith.constant 0 : i32
    return %c0_i32, %c0_i32_0 : i32, i32
  }
  func.func @transform_9(%arg0: i32) -> (i32, i32) {
    %c0_i32 = arith.constant 0 : i32
    %c0_i32_0 = arith.constant 0 : i32
    %c0_i32_1 = arith.constant 0 : i32
    return %c0_i32, %c0_i32_0 : i32, i32
  }
  func.func @transform_10(%arg0: i32) -> (i32, i32) {
    %c0_i32 = arith.constant 0 : i32
    %c0_i32_0 = arith.constant 0 : i32
    %c0_i32_1 = arith.constant 0 : i32
    return %c0_i32, %c0_i32_0 : i32, i32
  }
  func.func @transform_11(%arg0: i32) -> (i32, i32) {
    %c0_i32 = arith.constant 0 : i32
    %c0_i32_0 = arith.constant 0 : i32
    %c0_i32_1 = arith.constant 0 : i32
    return %c0_i32, %c0_i32_0 : i32, i32
  }
  func.func @transform_12(%arg0: i32) -> (i32, i32) {
    %c0_i32 = arith.constant 0 : i32
    %c0_i32_0 = arith.constant 0 : i32
    return %arg0, %c0_i32 : i32, i32
  }
}

</mosaic_0001>

<bundles_post_ra>
// kernel: tpu_custom_call.1
= control target key start
LH: loop header
LB: loop body
LE: loop exit
PB: predicated region body
PF: predicated region fallthrough
CT: control target
= control target key end

     0   :  { %17 = vsyncpa [#allocation3], 0  ;;  %s1157_s0 = inlined_call_operand.hbm [shape: f32[2,16], index: 0, kind: input, shape index: {}]   ;;  %s1158_s1 = inlined_call_operand.hbm [shape: f32[2,8], index: 1, kind: input, shape index: {}]   ;;  %s1159_s2 = inlined_call_operand.hbm [shape: bf16[16,256], index: 2, kind: input, shape index: {}]   ;;  %s1160_s3 = inlined_call_operand.hbm [shape: bf16[8,256], index: 3, kind: input, shape index: {}]   ;;  %s1161_s4 = inlined_call_operand.vmem [shape: f32[1,256], index: 4, kind: input, shape index: {}]   ;;  %s1162_s5 = inlined_call_operand.hbm [shape: bf16[128,128], index: 5, kind: input, shape index: {}]   ;;  %s1163_s6 = inlined_call_operand.hbm [shape: bf16[128,128], index: 6, kind: input, shape index: {}]   ;;  %s1164_s7 = inlined_call_operand.vmem [shape: f32[1,128], index: 7, kind: input, shape index: {}]   ;;  %s1165_s8 = inlined_call_operand.vmem [shape: f32[1,128], index: 8, kind: input, shape index: {}]   ;;  %s1166_s9 = inlined_call_operand.hbm [shape: bf16[128,128], index: 9, kind: input, shape index: {}]   ;;  %s1167_s10 = inlined_call_operand.hbm [shape: bf16[128,128], index: 10, kind: input, shape index: {}]   ;;  %s1168_s11 = inlined_call_operand.vmem [shape: f32[1,128], index: 11, kind: input, shape index: {}]   ;;  %s1169_s12 = inlined_call_operand.hbm [shape: f32[2,128], index: 12, kind: output, shape index: {}]  }
   0x1   :  { %18 = vsyncpa [#allocation6], 0 }
   0x2   :  { %19 = vsyncpa [#allocation9], 0 }
   0x3   :  { %20 = vsyncpa [#allocation12], 0 }
   0x4   :  { %21 = vsyncpa [#allocation15], 0  ;;  %s39_s23 = sshll.u32 %s1158_s1, 4  ;;  %s40_s23 = int_to_ptr.hbm [resolvable:$true] %s39_s23 }
   0x5   :  { %22 = vsyncpa [#allocation4], 0  ;;  %s1028_s24 = smov [#allocation5]   ;;  %s63_s28 = sshll.u32 %s1160_s3, 4  ;;  %s64_s28 = int_to_ptr.hbm [resolvable:$true] %s63_s28 }
   0x6   :  { %s41_s25 = sshll.u32 %s1028_s24, 4  ;;  %s1029_s29 = smov [#allocation8]   ;;  %s42_s25 = int_to_ptr.vmem [resolvable:$true] %s41_s25 }
   0x7   :  { %44 = dma.hbm_to_vmem [thread:$0]  %s40_s23, 32, %s42_s25, [#allocation6]  }
   0x8   :  { %s65_s30 = sshll.u32 %s1029_s29, 4  ;;  %s88_s15 = sshll.u32 %s1163_s6, 4  ;;  %s66_s30 = int_to_ptr.vmem [resolvable:$true] %s65_s30  ;;  %s89_s15 = int_to_ptr.hbm [resolvable:$true] %s88_s15 }
   0x9   :  { %68 = dma.hbm_to_vmem [thread:$0]  %s64_s28, 128, %s66_s30, [#allocation9]  }
   0xa   :  { %s1030_s1 = smov [#allocation11]   ;;  %s28_s19 = sshll.u32 %s1157_s0, 4  ;;  %s29_s19 = int_to_ptr.hbm [resolvable:$true] %s28_s19 }
   0xb   :  { %s90_s16 = sshll.u32 %s1030_s1, 4  ;;  %s1031_s20 = smov 64   ;;  %s91_s16 = int_to_ptr.vmem [resolvable:$true] %s90_s16 }
   0xc   :  { %s1032_s3 = smov 4   ;;  %s1033_s21 = smov [#allocation2]  }
   0xd   :  { %96 = dma.hbm_to_vmem [thread:$0]  %s89_s15, 1024, %s91_s16, [#allocation12], %s1031_s20, %s1031_s20, %s1032_s3  }
   0xe   :  { %s30_s22 = sshll.u32 %s1033_s21, 4  ;;  %s49_s6 = sshll.u32 %s1159_s2, 4  ;;  %s31_s22 = int_to_ptr.vmem [resolvable:$true] %s30_s22  ;;  %s50_s6 = int_to_ptr.hbm [resolvable:$true] %s49_s6 }
   0xf   :  { %33 = dma.hbm_to_vmem [thread:$0]  %s29_s19, 32, %s31_s22, [#allocation3]  }
  0x10   :  { %s1034_s25 = smov [#allocation7]   ;;  %s75_s28 = sshll.u32 %s1162_s5, 4  ;;  %s76_s28 = int_to_ptr.hbm [resolvable:$true] %s75_s28 }
  0x11   :  { %s51_s26 = sshll.u32 %s1034_s25, 4  ;;  %s1035_s29 = smov 128   ;;  %s52_s26 = int_to_ptr.vmem [resolvable:$true] %s51_s26 }
  0x12   :  { %s1036_s30 = smov 8   ;;  %s1037_s13 = smov [#allocation10]  }
  0x13   :  { %57 = dma.hbm_to_vmem [thread:$0]  %s50_s6, 256, %s52_s26, [#allocation6], %s1035_s29, %s1035_s29, %s1036_s30  }
  0x14   :  { %s77_s14 = sshll.u32 %s1037_s13, 4  ;;  %s105_s2 = sshll.u32 %s1166_s9, 4  ;;  %s78_s14 = int_to_ptr.vmem [resolvable:$true] %s77_s14  ;;  %s106_s2 = int_to_ptr.hbm [resolvable:$true] %s105_s2 }
  0x15   :  { %83 = dma.hbm_to_vmem [thread:$0]  %s76_s28, 1024, %s78_s14, [#allocation9], %s1031_s20, %s1031_s20, %s1032_s3  }
  0x16   :  { %s118_s5 = sshll.u32 %s1167_s10, 4  ;;  %s1038_s18 = smov [#allocation13]   ;;  %s119_s5 = int_to_ptr.hbm [resolvable:$true] %s118_s5 }
  0x17   :  { %s107_s19 = sshll.u32 %s1038_s18, 4  ;;  %s1039_s21 = smov [#allocation14]   ;;  %s108_s19 = int_to_ptr.vmem [resolvable:$true] %s107_s19 }
  0x18   :  { %113 = dma.hbm_to_vmem [thread:$0]  %s106_s2, 1024, %s108_s19, [#allocation12], %s1031_s20, %s1031_s20, %s1032_s3  }
  0x19   :  { %s120_s9 = sshll.u32 %s1039_s21, 4  ;;  %s121_s9 = int_to_ptr.vmem [resolvable:$true] %s120_s9 }
  0x1a   :  { %126 = dma.hbm_to_vmem [thread:$0]  %s119_s5, 1024, %s121_s9, [#allocation15], %s1031_s20, %s1031_s20, %s1032_s3  }
  0x1b   :  { %1016 = dma.done.wait [#allocation3], 32  }
  0x1c   :  { %1017 = vsyncadd [#allocation3], 4294967264 }
  0x1d   :  { %1018 = dma.done.wait [#allocation6], 288  }
  0x1e   :  { %1019 = vsyncadd [#allocation6], 4294967008 }
  0x1f   :  { %1020 = dma.done.wait [#allocation9], 1152  }
  0x20   :  { %1021 = vsyncadd [#allocation9], 4294966144 }
  0x21   :  { %1022 = dma.done.wait [#allocation12], 2048  }
  0x22   :  { %1023 = vsyncadd [#allocation12], 4294965248 }
  0x23   :  { %1024 = dma.done.wait [#allocation15], 1024  }
  0x24   :  { %1025 = vsyncadd [#allocation15], 4294966272  ;;  %v614_v0 = vld [vmem:[#allocation7] sm:$0xf]  ;;  %v751_v1 = vld [vmem:[#allocation7 + $0x4] sm:$0xf0] }
  0x25   :  { %v750_v2 = vld [vmem:[#allocation7 + $0x4] sm:$0xf]  ;;  %v615_v3 = vor.u32 %v751_v1, %v614_v0  ;;  %v616_v4 = vld [vmem:[#allocation7 + $0x8] sm:$0xf0]  ;;  %v168_v5 = vld [vmem:[#allocation8] sm:$0xff]  ;;  %vm178_vm0 = vcmask 1043456  }
  0x26   :  { %v162_v6 = vld [vmem:[#allocation2] sm:$0x3]  ;;  %v619_v7 = vor.u32 %v750_v2, %v616_v4  ;;  %v170_v8 = vunpack.c.l.b16 %v168_v5  ;;  %v171_v9 = vunpack.c.h.b16 %v168_v5  ;;  %vm221_vm1 = vcmask 130048   ;;  %v164_v11 = vld [vmem:[#allocation5] sm:$0x3]  ;;  %v759_v14 = vld [vmem:[#allocation10 + $0x38] sm:$0xff] }
  0x27   :  { %v163_v10 = vpack.c.bf16 %v162_v6, %v162_v6  ;;  %232 = vmatpush.bf16.msra.mxu2 %v615_v3  ;;  %v767_v15 = vld [vmem:[#allocation11 + $0x38] sm:$0xff]  ;;  %v165_v18 = vpack.c.bf16 %v164_v11, %v164_v11  ;;  %vm174_vm2 = vcmask 64512   ;;  %v758_v19 = vld [vmem:[#allocation10 + $0x30] sm:$0xff]  ;;  %v757_v21 = vld [vmem:[#allocation10 + $0x28] sm:$0xff]  ;;  %s596_s0 = sshll.u32 %s1169_s12, 4  ;;  %s597_s0 = int_to_ptr.hbm [resolvable:$true] %s596_s0 }
  0x28   :  { %245 = vmatpush.bf16.msra.mxu3 %v619_v7  ;;  %v172_v12 = vpack.c.b16 %v170_v8, %v170_v8  ;;  %v173_v13 = vpack.c.b16 %v171_v9, %v171_v9  ;;  %v766_v20 = vld [vmem:[#allocation11 + $0x30] sm:$0xff]  ;;  %v765_v22 = vld [vmem:[#allocation11 + $0x28] sm:$0xff]  ;;  %v756_v23 = vld [vmem:[#allocation10 + $0x20] sm:$0xff] }
  0x29   :  { %v764_v24 = vld [vmem:[#allocation11 + $0x20] sm:$0xff]  ;;  %v755_v25 = vld [vmem:[#allocation10 + $0x18] sm:$0xff]  ;;  %v754_v27 = vld [vmem:[#allocation10 + $0x10] sm:$0xff] }
  0x2a   :  { %v180_v16 = vsel %vm178_vm0, %v172_v12, 0  ;;  %v183_v17 = vsel %vm178_vm0, %v173_v13, 0  ;;  %620 = vmatmul.msk.bf16.vlgmr.msra.gmra.mxu2 %vm221_vm1, %v163_v10  ;;  %v763_v26 = vld [vmem:[#allocation11 + $0x18] sm:$0xff]  ;;  %v762_v28 = vld [vmem:[#allocation11 + $0x10] sm:$0xff]  ;;  %v753_v29 = vld [vmem:[#allocation10 + $0x8] sm:$0xff] }
  0x2b   :  { %192 = vmatpush.bf16.msra.mxu0 %v180_v16  ;;  %205 = vmatpush.bf16.msra.mxu1 %v183_v17  ;;  %v761_v30 = vld [vmem:[#allocation11 + $0x8] sm:$0xff]  ;;  %v752_v31 = vld [vmem:[#allocation10] sm:$0xff]  ;;  %v783_v33 = vld [vmem:[#allocation14 + $0x38] sm:$0xff] }
  0x2c   :  { %621 = vmatmul.msk.bf16.vlgmr.msra.gmra.mxu3 %vm221_vm1, %v163_v10  ;;  %v760_v32 = vld [vmem:[#allocation11] sm:$0xff]  ;;  %v775_v34 = vld [vmem:[#allocation13 + $0x38] sm:$0xff]  ;;  %509 = vmatpush.bf16.msrb.mxu2 %v783_v33  ;;  %v782_v35 = vld [vmem:[#allocation14 + $0x30] sm:$0xff] }
  0x2d   :  { %570 = vmatpush.bf16.msrb.mxu3 %v775_v34  ;;  %v774_v36 = vld [vmem:[#allocation13 + $0x30] sm:$0xff]  ;;  %v781_v37 = vld [vmem:[#allocation14 + $0x28] sm:$0xff]  ;;  %v780_v39 = vld [vmem:[#allocation14 + $0x20] sm:$0xff] }
  0x2e   :  { %610 = vmatmul.msk.bf16.vlgmr.msra.gmra.mxu0 %vm174_vm2, %v165_v18  ;;  %611 = vmatmul.msk.bf16.vlgmr.msra.gmra.mxu1 %vm174_vm2, %v165_v18  ;;  %v773_v38 = vld [vmem:[#allocation13 + $0x28] sm:$0xff]  ;;  %v772_v40 = vld [vmem:[#allocation13 + $0x20] sm:$0xff]  ;;  %v779_v41 = vld [vmem:[#allocation14 + $0x18] sm:$0xff] }
  0x2f   :  { %347 = vmatpush.bf16.msrb.mxu0 %v759_v14  ;;  %413 = vmatpush.bf16.msrb.mxu1 %v767_v15  ;;  %v771_v42 = vld [vmem:[#allocation13 + $0x18] sm:$0xff]  ;;  %v251_v43 = vld [vmem:[%s1161_s4] sm:$0x3]  ;;  %v778_v44 = vld [vmem:[#allocation14 + $0x10] sm:$0xff] }
  0x30   :  { %510 = vmatpush.bf16.msrb.mxu2 %v782_v35  ;;  %v770_v45 = vld [vmem:[#allocation13 + $0x10] sm:$0xff]  ;;  %v253_v48 = vperm.slane %v251_v43, 0  ;;  %v254_v51 = vperm.slane %v251_v43, 1  ;;  %v777_v0 = vld [vmem:[#allocation14 + $0x8] sm:$0xff]  ;;  %v776_v2 = vld [vmem:[#allocation14] sm:$0xff] }
  0x31   :  { %571 = vmatpush.bf16.msrb.mxu3 %v774_v36  ;;  %v769_v1 = vld [vmem:[#allocation13 + $0x8] sm:$0xff]  ;;  %v768_v3 = vld [vmem:[#allocation13] sm:$0xff] }
  0x32   :  { %v797_v4 = vld [vmem:[%s1164_s7] ss:$0 sm:$0xff]  ;;  %s1040_s7 = smov [#allocation16]  }
  0x33   :  { %348 = vmatpush.bf16.msrb.mxu0 %v758_v19  ;;  %414 = vmatpush.bf16.msrb.mxu1 %v766_v20  ;;  %v798_v5 = vld [vmem:[%s1165_s8] ss:$0 sm:$0xff]  ;;  %s594_s8 = sshll.u32 %s1040_s7, 4  ;;  %s595_s8 = int_to_ptr.vmem [resolvable:$true] %s594_s8 }
  0x34   :  { %511 = vmatpush.bf16.msrb.mxu2 %v781_v37  ;;  %v799_v17 = vld [vmem:[%s1168_s11] ss:$0 sm:$0xff] }
  0x35   :  { %572 = vmatpush.bf16.msrb.mxu3 %v773_v38 }
  0x37   :  { %349 = vmatpush.bf16.msrb.mxu0 %v757_v21  ;;  %415 = vmatpush.bf16.msrb.mxu1 %v765_v22 }
  0x38   :  { %512 = vmatpush.bf16.msrb.mxu2 %v780_v39 }
  0x39   :  { %573 = vmatpush.bf16.msrb.mxu3 %v772_v40 }
  0x3b   :  { %350 = vmatpush.bf16.msrb.mxu0 %v756_v23  ;;  %416 = vmatpush.bf16.msrb.mxu1 %v764_v24 }
  0x3c   :  { %513 = vmatpush.bf16.msrb.mxu2 %v779_v41 }
  0x3d   :  { %574 = vmatpush.bf16.msrb.mxu3 %v771_v42 }
  0x3f   :  { %351 = vmatpush.bf16.msrb.mxu0 %v755_v25  ;;  %417 = vmatpush.bf16.msrb.mxu1 %v763_v26 }
  0x40   :  { %514 = vmatpush.bf16.msrb.mxu2 %v778_v44 }
  0x41   :  { %575 = vmatpush.bf16.msrb.mxu3 %v770_v45 }
  0x43   :  { %352 = vmatpush.bf16.msrb.mxu0 %v754_v27  ;;  %418 = vmatpush.bf16.msrb.mxu1 %v762_v28 }
  0x44   :  { %515 = vmatpush.bf16.msrb.mxu2 %v777_v0 }
  0x45   :  { %576 = vmatpush.bf16.msrb.mxu3 %v769_v1 }
  0x47   :  { %353 = vmatpush.bf16.msrb.mxu0 %v753_v29  ;;  %419 = vmatpush.bf16.msrb.mxu1 %v761_v30 }
  0x48   :  { %516 = vmatpush.bf16.msrb.mxu2 %v776_v2 }
  0x49   :  { %577 = vmatpush.bf16.msrb.mxu3 %v768_v3 }
  0x4b   :  { %354 = vmatpush.bf16.msrb.mxu0 %v752_v31  ;;  %420 = vmatpush.bf16.msrb.mxu1 %v760_v32 }
  0xab   :  { %v194_v46 = vpop.f32.mrf.mxu0  ;;  %v207_v47 = vpop.f32.mrf.mxu1 }
  0xad   :  { %v234_v49 = vpop.f32.mrf.mxu2 }
  0xae   :  { %v235_v50 = vadd.f32 %v234_v49, %v194_v46 }
  0xaf   :  { %v247_v52 = vpop.f32.mrf.mxu3 }
  0xb0   :  { %v257_v53 = vadd.f32 %v253_v48, %v235_v50  ;;  %v248_v54 = vadd.f32 %v247_v52, %v207_v47 }
  0xb2   :  { %v259_v55 = vmax.f32 %v257_v53, 0.0  ;;  %v258_v56 = vadd.f32 %v254_v51, %v248_v54 }
  0xb3   :  { %v196_v57 = vpop.f32.mrf.mxu0  ;;  %v209_v58 = vpop.f32.mrf.mxu1 }
  0xb4   :  { %v261_v59 = vpack.c.bf16 %v259_v55, %v259_v55  ;;  %v260_v60 = vmax.f32 %v258_v56, 0.0 }
  0xb5   :  { %v236_v61 = vpop.f32.mrf.mxu2 }
  0xb6   :  { %v262_v62 = vpack.c.bf16 %v260_v60, %v260_v60  ;;  %355 = vmatmul.bf16.vlgmr.msrb.gmra.mxu0 %v261_v59 }
  0xb7   :  { %v249_v63 = vpop.f32.mrf.mxu3 }
  0xb8   :  { %421 = vmatmul.bf16.vlgmr.msrb.gmra.mxu1 %v262_v62 }
 0x133   :  { %v356_v6 = vpop.f32.mrf.mxu0 }
 0x134   :  { %v357_v7 = vadd.f32 %v797_v4, %v356_v6 }
 0x135   :  { %v422_v8 = vpop.f32.mrf.mxu1 }
 0x136   :  { %v360_v9 = vmax.f32 %v357_v7, 0.0  ;;  %v423_v10 = vadd.f32 %v798_v5, %v422_v8 }
 0x138   :  { %v427_v11 = vpack.c.bf16 %v360_v9, %v360_v9  ;;  %v426_v12 = vmax.f32 %v423_v10, 0.0 }
 0x13a   :  { %v444_v13 = vpack.c.bf16 %v426_v12, %v426_v12  ;;  %578 = vmatmul.bf16.vlgmr.msrb.gmra.mxu3 %v427_v11 }
 0x13b   :  { %v358_v14 = vpop.f32.mrf.mxu0 }
 0x13c   :  { %517 = vmatmul.bf16.vlgmr.msrb.gmra.mxu2 %v444_v13 }
 0x13d   :  { %v424_v15 = vpop.f32.mrf.mxu1 }
 0x1bd   :  { %v579_v16 = vpop.f32.mrf.mxu3 }
 0x1bf   :  { %v518_v18 = vpop.f32.mrf.mxu2 }
 0x1c0   :  { %v580_v19 = vadd.f32 %v579_v16, %v518_v18 }
 0x1c2   :  { %v587_v20 = vadd.f32 %v799_v17, %v580_v19 }
 0x1c4   :  { %588 = vst [vmem:[#allocation16] sm:$0x3] %v587_v20 }
 0x1c5   :  { %v581_v21 = vpop.f32.mrf.mxu3  ;;  %599 = dma.vmem_to_hbm [thread:$0]  %s595_s8, 32, %s597_s0, [#allocation4]  }
 0x1c7   :  { %v520_v22 = vpop.f32.mrf.mxu2 }
 0x1c8   :  { %1026 = dma.done.wait [#allocation4], 32  }
 0x1c9   :  { %1027 = vsyncadd [#allocation4], 4294967264 }
 0x1ca   :  { %604 = vsyncpa [#allocation3], 1 }
 0x1cb   :  { %605 = vsyncpa [#allocation6], 1 }
 0x1cc   :  { %606 = vsyncpa [#allocation9], 1 }
 0x1cd   :  { %607 = vsyncpa [#allocation12], 1 }
 0x1ce   :  { %608 = vsyncpa [#allocation15], 1 }
 0x1cf   :  { %609 = vsyncpa [#allocation4], 1 }

</bundles_post_ra>
